<compile_context>
chip_gen: v5e
topology: v5e:2x2
jax: 0.10.0
libtpu: 0.0.40
codegen_flags: <defaults>
</compile_context>

<pallas_src>
import functools

import numpy as np
import jax
import jax.numpy as jnp
from jax.experimental import pallas as pl
from jax.experimental.pallas import tpu as pltpu

_LANE = 128
_NEG_SLOPE = 0.2


def _leaky_relu(x):
    return jnp.where(x >= 0, x, _NEG_SLOPE * x)


# --------------------------------------------------------------------------------------------
# Packed-layout weight preparation (wrapper side, tiny, runs once per subnet call)
# --------------------------------------------------------------------------------------------
def _banded_row_taps(w, W, P, lin_pad, lout_pad):
    """w: (K, K, Cin, Cout) HWIO -> (K, lin_pad, lout_pad) banded matrices.

    Tap dy maps a packed input row (lane = wi*Cin+ci) to a packed output row
    (lane = wo*Cout+co), encoding every dx column shift and the conv's 'same' column
    zero padding: B[dy, wi*Cin+ci, wo*Cout+co] = w[dy, wi-wo+P, ci, co] if 0<=wi-wo+P<K else 0.
    """
    K, _, Cin, Cout = w.shape
    wi = jnp.arange(W)[:, None]
    wo = jnp.arange(W)[None, :]
    dx = wi - wo + P
    valid = (dx >= 0) & (dx < K)
    g = w.astype(jnp.float32)[:, jnp.clip(dx, 0, K - 1), :, :]     # (K, W, W, Cin, Cout)
    g = jnp.where(valid[None, :, :, None, None], g, 0.0)
    band = jnp.transpose(g, (0, 1, 3, 2, 4)).reshape(K, W * Cin, W * Cout)
    return jnp.pad(band, ((0, 0), (0, lin_pad - W * Cin), (0, lout_pad - W * Cout)))


def _blockdiag_1x1(w2, W, lout_pad):
    """1x1 conv (C, C) -> block-diagonal (W*C, W*C) matrix in the packed-row layout."""
    C = w2.shape[0]
    m = jnp.einsum("pq,ij->piqj", jnp.eye(W, dtype=jnp.float32),
                   w2.astype(jnp.float32)).reshape(W * C, W * C)
    return jnp.pad(m, ((0, lout_pad - W * C), (0, lout_pad - W * C)))


def _packed_bias(b, W, lout_pad):
    v = jnp.tile(b.astype(jnp.float32), W)
    return jnp.pad(v, (0, lout_pad - v.shape[0])).reshape(1, lout_pad)


# --------------------------------------------------------------------------------------------
# Pallas kernel: fused conv(KxK) -> LeakyReLU -> conv(1x1) -> LeakyReLU -> conv(KxK)
# --------------------------------------------------------------------------------------------
def _dense_subnet_kernel(x_ref, w1_ref, w2_ref, w3_ref, b1_ref, b2_ref, b3_ref,
                         o_ref, xin_ref, act_ref, *, K, P, TH, LinP, LoutP, cdtype):
    """One (batch, row-tile) grid step, lane-packed layout.

    x_ref  : (1, H, LinP)       whole image of this batch element; lane dim = W*Cin (padded)
    w1_ref : (K, LinP, LoutP)   banded conv1 matrices (one per row tap dy)
    w2_ref : (LoutP, LoutP)     block-diagonal 1x1 conv
    w3_ref : (K, LoutP, LoutP)  banded conv3 matrices
    b*_ref : (1, LoutP) f32     pixel-tiled biases
    o_ref  : (1, TH, LoutP)     lane-dense output rows for this tile
    xin_ref: (TH+4P, LinP)      staged input rows incl. conv1+conv3 halo (compute dtype)
    act_ref: (TH+2P, LoutP)     conv2 activations incl. conv3 halo (compute dtype)
    """
    THE = TH + 2 * P
    r = pl.program_id(1)
    nrt = pl.num_programs(1)
    r0 = r * TH
    if TH % 8 == 0:
        r0 = pl.multiple_of(r0, 8)

    # ---- stage input rows [r0-2P, r0+TH+2P); halo rows outside the image are zeroed --------
    xin_ref[pl.ds(2 * P, TH), :] = x_ref[0, pl.ds(r0, TH), :]
    if P > 0:
        halo = 2 * P

        @pl.when(r > 0)
        def _():
            xin_ref[pl.ds(0, halo), :] = x_ref[0, pl.ds(r0 - halo, halo), :]

        @pl.when(r == 0)
        def _():
            xin_ref[pl.ds(0, halo), :] = jnp.zeros((halo, LinP), cdtype)

        @pl.when(r < nrt - 1)
        def _():
            xin_ref[pl.ds(halo + TH, halo), :] = x_ref[0, pl.ds(r0 + TH, halo), :]

        @pl.when(r == nrt - 1)
        def _():
            xin_ref[pl.ds(halo + TH, halo), :] = jnp.zeros((halo, LinP), cdtype)

    # ---- conv1 (KxK): K banded full-lane matmuls, summed as traced values (no RMW) ----------
    h = jnp.dot(xin_ref[pl.ds(0, THE), :], w1_ref[0], preferred_element_type=jnp.float32)
    for dy in range(1, K):
        h = h + jnp.dot(xin_ref[pl.ds(dy, THE), :], w1_ref[dy],
                        preferred_element_type=jnp.float32)

    # ---- bias + LeakyReLU (f32), conv2 (1x1) as one block-diag matmul, bias + LeakyReLU -----
    h = _leaky_relu(h + b1_ref[...])
    g = jnp.dot(h.astype(cdtype), w2_ref[...], preferred_element_type=jnp.float32)
    g = _leaky_relu(g + b2_ref[...])
    act_ref[...] = g.astype(cdtype)

    # conv3 'same' row padding: zero ONLY the out-of-image act rows on edge tiles.
    if P > 0:
        @pl.when(r == 0)
        def _():
            act_ref[pl.ds(0, P), :] = jnp.zeros((P, LoutP), cdtype)

        @pl.when(r == nrt - 1)
        def _():
            act_ref[pl.ds(THE - P, P), :] = jnp.zeros((P, LoutP), cdtype)

    # ---- conv3 (KxK): K banded matmuls, summed, one lane-dense store -------------------------
    out = jnp.dot(act_ref[pl.ds(0, TH), :], w3_ref[0], preferred_element_type=jnp.float32)
    for dy in range(1, K):
        out = out + jnp.dot(act_ref[pl.ds(dy, TH), :], w3_ref[dy],
                            preferred_element_type=jnp.float32)
    o_ref[0] = (out + b3_ref[...]).astype(o_ref.dtype)


# --------------------------------------------------------------------------------------------
# VMEM budgeting / generation-aware row-tile selection
# --------------------------------------------------------------------------------------------
def _vmem_capacity_bytes():
    try:
        info = pltpu.get_tpu_info()
        cap = getattr(info, "vmem_capacity_bytes", None)
        if cap:
            return int(cap)
    except Exception:
        pass
    return 64 * 1024 * 1024          # conservative default (v7x per-core VMEM)


def _kernel_vmem_bytes(H, TH, P, LinP, LoutP, K, cbytes, obytes):
    """Full accounting of every buffer resident during one grid step."""
    THE, THI = TH + 2 * P, TH + 4 * P
    x_blk = 2 * H * LinP * cbytes                                   # double-buffered input
    o_blk = 2 * TH * LoutP * obytes                                 # double-buffered output
    w_blk = 2 * (K * LinP * LoutP + LoutP * LoutP + K * LoutP * LoutP) * cbytes
    b_blk = 2 * 3 * LoutP * 4
    scratch = THI * LinP * cbytes + THE * LoutP * cbytes
    live = 3 * THE * LoutP * 4                                      # traced f32 h / g / out
    return x_blk + o_blk + w_blk + b_blk + scratch + live


def _auto_row_tile(H, P, LinP, LoutP, K, cbytes, obytes, N, budget):
    """Largest legal row tile fitting the VMEM budget; prefer >=2 tiles when the batch alone
    cannot keep both TensorCores busy."""
    cands = [th for th in range(H, 0, -1)
             if H % th == 0 and (th == H or (th % 8 == 0 and th >= max(2 * P, 1)))]
    ok = [th for th in cands
          if _kernel_vmem_bytes(H, th, P, LinP, LoutP, K, cbytes, obytes) <= budget]
    if not ok:
        ok = [cands[-1]]             # smallest legal tile
    if N < 4:
        multi = [th for th in ok if H // th >= 2]
        if multi:
            return multi[0]
    return ok[0]


# --------------------------------------------------------------------------------------------
# Wrapper
# --------------------------------------------------------------------------------------------
def dense_subnet_nhwc(x_nhwc, params, kernel_size, *, row_tile=None,
                      compute_dtype=jnp.bfloat16, out_dtype=None):
    """conv(KxK)->LReLU->conv(1x1)->LReLU->conv(KxK), NHWC in / NHWC out (lane-packed kernel)."""
    w1, b1, w2, b2, w3, b3 = params
    N, H, W, Cin = x_nhwc.shape
    K = int(kernel_size)
    assert K % 2 == 1, "only odd kernel sizes give the module's 'same' padding"
    assert w1.shape[:3] == (K, K, Cin)
    Cout = w1.shape[3]
    P = (K - 1) // 2

    Lin, Lout = W * Cin, W * Cout
    LinP = ((Lin + _LANE - 1) // _LANE) * _LANE
    LoutP = ((Lout + _LANE - 1) // _LANE) * _LANE
    assert LinP <= 2048 and LoutP <= 2048, \
        "W*C too large for the banded lane-packed layout"  # TODO(synk): channel-lane fallback

    cdtype = np.dtype(compute_dtype)
    odtype = np.dtype(out_dtype) if out_dtype is not None else cdtype
    cbytes, obytes = cdtype.itemsize, odtype.itemsize

    vmem_limit = int(min(0.75 * _vmem_capacity_bytes(), 100 * 1024 * 1024))
    if row_tile is None:
        TH = _auto_row_tile(H, P, LinP, LoutP, K, cbytes, obytes, N,
                            budget=int(0.7 * vmem_limit))
    else:
        TH = int(row_tile)
    assert H % TH == 0, "row_tile must divide H"
    R = H // TH
    assert R == 1 or (TH >= 2 * P and TH % 8 == 0), \
        "row_tile must be >= 2*pad and a multiple of 8 when tiling rows"
    THE, THI = TH + 2 * P, TH + 4 * P

    # ---- pack input / weights (tiny; the banded matrices fold the full im2col + padding) ----
    x_pk = x_nhwc.astype(cdtype).reshape(N, H, Lin)
    if LinP > Lin:
        x_pk = jnp.pad(x_pk, ((0, 0), (0, 0), (0, LinP - Lin)))
    w1b = _banded_row_taps(w1, W, P, LinP, LoutP).astype(cdtype)
    w2b = _blockdiag_1x1(w2, W, LoutP).astype(cdtype)
    w3b = _banded_row_taps(w3, W, P, LoutP, LoutP).astype(cdtype)
    b1p = _packed_bias(b1, W, LoutP)
    b2p = _packed_bias(b2, W, LoutP)
    b3p = _packed_bias(b3, W, LoutP)

    kernel = functools.partial(_dense_subnet_kernel, K=K, P=P, TH=TH,
                               LinP=LinP, LoutP=LoutP, cdtype=cdtype)

    out = pl.pallas_call(
        kernel,
        out_shape=jax.ShapeDtypeStruct((N, H, LoutP), odtype),
        grid_spec=pltpu.PrefetchScalarGridSpec(
            num_scalar_prefetch=0,
            grid=(N, R),
            in_specs=[
                pl.BlockSpec((1, H, LinP), lambda n, r: (n, 0, 0)),
                pl.BlockSpec((K, LinP, LoutP), lambda n, r: (0, 0, 0)),
                pl.BlockSpec((LoutP, LoutP), lambda n, r: (0, 0)),
                pl.BlockSpec((K, LoutP, LoutP), lambda n, r: (0, 0, 0)),
                pl.BlockSpec((1, LoutP), lambda n, r: (0, 0)),
                pl.BlockSpec((1, LoutP), lambda n, r: (0, 0)),
                pl.BlockSpec((1, LoutP), lambda n, r: (0, 0)),
            ],
            out_specs=pl.BlockSpec((1, TH, LoutP), lambda n, r: (n, r, 0)),
            scratch_shapes=[
                pltpu.VMEM((THI, LinP), cdtype),    # staged input rows (+ conv1/conv3 halo)
                pltpu.VMEM((THE, LoutP), cdtype),   # conv2 activations (+ conv3 halo)
            ],
        ),
        compiler_params=pltpu.CompilerParams(
            dimension_semantics=("parallel", "parallel"),
            vmem_limit_bytes=vmem_limit,
        ),
    )(x_pk, w1b, w2b, w3b, b1p, b2p, b3p)

    return out[:, :, :Lout].reshape(N, H, W, Cout)


def dense_subnet_forward_nchw(x_nchw, params, kernel_size, **kw):
    """NCHW wrapper matching the PyTorch layout (transposes only at the boundary)."""
    x = jnp.transpose(x_nchw, (0, 2, 3, 1))
    y = dense_subnet_nhwc(x, params, kernel_size, **kw)
    return jnp.transpose(y, (0, 3, 1, 2))


# --------------------------------------------------------------------------------------------
# Parameter init (mirrors INV_block._initialize_weights / InvertibleConv1x1.__init__)
# --------------------------------------------------------------------------------------------
def init_dense_block_params(key, in_channels, out_channels, kernel_size, scale=0.01):
    k1, k2, k3 = jax.random.split(key, 3)

    def kaiming(k, kh, kw, cin, cout):
        std = (2.0 / (cin * kh * kw)) ** 0.5                # kaiming_normal, fan_in, a=0
        return scale * std * jax.random.normal(k, (kh, kw, cin, cout), jnp.float32)

    K = kernel_size
    w1 = kaiming(k1, K, K, in_channels, out_channels)
    w2 = kaiming(k2, 1, 1, out_channels, out_channels).reshape(out_channels, out_channels)
    w3 = kaiming(k3, K, K, out_channels, out_channels)
    z = lambda c: jnp.zeros((c,), jnp.float32)
    return (w1, z(out_channels), w2, z(out_channels), w3, z(out_channels))


def init_inv_block_params(key, split_len1, split_len2, kernel_size, scale=0.01):
    kr, ky, kf = jax.random.split(key, 3)
    return {"r": init_dense_block_params(kr, split_len1, split_len2, kernel_size, scale),
            "y": init_dense_block_params(ky, split_len1, split_len2, kernel_size, scale),
            "f": init_dense_block_params(kf, split_len2, split_len1, kernel_size, scale)}


def init_flow_block_params(key, block_num, split_len1, split_len2, kernel_size, scale=0.01):
    C = split_len1 + split_len2
    modules = []
    for _ in range(block_num):
        for _ in range(4):
            key, kq, kb = jax.random.split(key, 3)
            w = np.linalg.qr(np.asarray(jax.random.normal(kq, (C, C), jnp.float32)))[0]
            modules.append({"w1x1": jnp.asarray(w.astype(np.float32))})
            modules.append({"inv": init_inv_block_params(kb, split_len1, split_len2,
                                                         kernel_size, scale)})
    return modules


# --------------------------------------------------------------------------------------------
# FlowBlock forward (affine coupling + invertible 1x1 convs are memory-bound glue -> plain JAX)
# --------------------------------------------------------------------------------------------
def _coupling_scale(s, clamp):
    return jnp.exp(clamp * 2.0 * (jax.nn.sigmoid(s) - 0.5))


def _invertible_conv1x1_nhwc(x, w, rev):
    if rev:
        flat = x.reshape(-1, x.shape[-1])
        y = jnp.linalg.solve(w, flat.T).T        # == flat @ inv(w).T without forming inv(w)
        return y.reshape(x.shape)
    return jnp.einsum("nhwc,oc->nhwo", x, w)


def _inv_block_nhwc(x, p, rev, *, kernel_size, split, clamp, subnet_fn):
    s1len, s2len = split
    x1, x2 = x[..., :s1len], x[..., s1len:s1len + s2len]
    # Coupling arithmetic stays f32 regardless of the subnet's (bf16) output dtype.
    sub = lambda z, q: subnet_fn(z, q, kernel_size).astype(jnp.float32)
    if not rev:
        t2 = sub(x2, p["f"])
        y1 = x1 + t2
        s1, t1 = sub(y1, p["r"]), sub(y1, p["y"])
        y2 = _coupling_scale(s1, clamp) * x2 + t1
    else:
        s1, t1 = sub(x1, p["r"]), sub(x1, p["y"])
        y2 = (x2 - t1) / _coupling_scale(s1, clamp)
        t2 = sub(y2, p["f"])
        y1 = x1 - t2
    return jnp.concatenate([y1, y2], axis=-1)


def flow_block_apply_nhwc(x, modules, rev, *, kernel_size, split, clamp=2.0, subnet_fn):
    seq = list(reversed(modules)) if rev else modules
    for m in seq:
        if "w1x1" in m:
            x = _invertible_conv1x1_nhwc(x, m["w1x1"], rev)
        else:
            x = _inv_block_nhwc(x, m["inv"], rev, kernel_size=kernel_size, split=split,
                                clamp=clamp, subnet_fn=subnet_fn)
    return x


def flow_block_forward(x_nchw, modules, rev=False, *, kernel_size, split, clamp=2.0,
                       subnet_fn):
    x = jnp.transpose(x_nchw, (0, 2, 3, 1))
    y = flow_block_apply_nhwc(x, modules, rev, kernel_size=kernel_size, split=split,
                              clamp=clamp, subnet_fn=subnet_fn)
    return jnp.transpose(y, (0, 3, 1, 2))


# --------------------------------------------------------------------------------------------
# Pure-JAX references (lax.conv) for correctness checks
# --------------------------------------------------------------------------------------------
def _dense_subnet_reference_nhwc(x, params, kernel_size):
    w1, b1, w2, b2, w3, b3 = params
    p = (kernel_size - 1) // 2
    dn1 = jax.lax.conv_dimension_numbers(x.shape, w1.shape, ("NHWC", "HWIO", "NHWC"))
    y = jax.lax.conv_general_dilated(x, w1, (1, 1), [(p, p), (p, p)],
                                     dimension_numbers=dn1) + b1
    y = _leaky_relu(y)
    y = jnp.einsum("nhwc,cd->nhwd", y, w2) + b2
    y = _leaky_relu(y)
    dn3 = jax.lax.conv_dimension_numbers(y.shape, w3.shape, ("NHWC", "HWIO", "NHWC"))
    y = jax.lax.conv_general_dilated(y, w3, (1, 1), [(p, p), (p, p)],
                                     dimension_numbers=dn3) + b3
    return y


def _dense_subnet_reference_nchw(x_nchw, params, kernel_size):
    x = jnp.transpose(x_nchw, (0, 2, 3, 1))
    return jnp.transpose(_dense_subnet_reference_nhwc(x, params, kernel_size), (0, 3, 1, 2))


# --------------------------------------------------------------------------------------------
if __name__ == "__main__":
    key = jax.random.PRNGKey(0)
    k_x, k_p, k_flow, k_xflow = jax.random.split(key, 4)

    # ---- (1) the fused Pallas subnet kernel vs a lax.conv reference -----------------------
    N, Cin, Cout, H, W, K = 2, 4, 8, 16, 16, 3
    x = jax.random.normal(k_x, (N, Cin, H, W), jnp.float32)
    # scale=1.0 here (instead of the module's 0.01) so the check is numerically meaningful.
    params = init_dense_block_params(k_p, Cin, Cout, K, scale=1.0)
    ref = _dense_subnet_reference_nchw(x, params, K)

    fwd_f32 = jax.jit(functools.partial(dense_subnet_forward_nchw, kernel_size=K,
                                        row_tile=H, compute_dtype=jnp.float32))
    out_f32 = jax.block_until_ready(fwd_f32(x, params))
    assert out_f32.shape == (N, Cout, H, W)
    assert jnp.allclose(out_f32, ref, atol=1e-4, rtol=1e-4), "f32 kernel mismatch"

    fwd_bf16 = jax.jit(functools.partial(dense_subnet_forward_nchw, kernel_size=K,
                                         row_tile=8, compute_dtype=jnp.bfloat16))
    out_bf16 = jax.block_until_ready(fwd_bf16(x, params))
    assert jnp.allclose(out_bf16.astype(jnp.float32), ref, atol=1e-1, rtol=1e-1), \
        "bf16 kernel mismatch"

    # ---- (2) full FlowBlock forward / reverse built on the Pallas subnet ------------------
    block_num, s1, s2 = 1, 4, 4
    modules = init_flow_block_params(k_flow, block_num, s1, s2, K, scale=0.01)
    x_flow = jax.random.normal(k_xflow, (N, s1 + s2, H, W), jnp.float32)

    pallas_subnet = functools.partial(dense_subnet_nhwc, compute_dtype=jnp.bfloat16)
    flow_kw = dict(kernel_size=K, split=(s1, s2), clamp=2.0)
    flow_fwd = jax.jit(functools.partial(flow_block_forward, rev=False,
                                         subnet_fn=pallas_subnet, **flow_kw))
    flow_rev = jax.jit(functools.partial(flow_block_forward, rev=True,
                                         subnet_fn=pallas_subnet, **flow_kw))

    y = jax.block_until_ready(flow_fwd(x_flow, modules))
    assert y.shape == x_flow.shape
    y_ref = flow_block_forward(x_flow, modules, rev=False,
                               subnet_fn=_dense_subnet_reference_nhwc, **flow_kw)
    assert jnp.allclose(y, y_ref, atol=1e-3, rtol=1e-3), "FlowBlock forward mismatch"

    x_back = jax.block_until_ready(flow_rev(y, modules))
    assert jnp.allclose(x_back, x_flow, atol=1e-3, rtol=1e-3), "FlowBlock round-trip mismatch"

    print("KERNEL_OK")
</pallas_src>

<mosaic_0001>
module attributes {stable_mosaic.version = 11 : i64} {
  func.func @_dense_subnet_kernel(%arg0: i32, %arg1: i32, %arg2: memref<1x16x128xf32, #tpu.memory_space<vmem>>, %arg3: memref<3x128x128xf32, #tpu.memory_space<vmem>>, %arg4: memref<128x128xf32, #tpu.memory_space<vmem>>, %arg5: memref<3x128x128xf32, #tpu.memory_space<vmem>>, %arg6: memref<1x128xf32, #tpu.memory_space<vmem>>, %arg7: memref<1x128xf32, #tpu.memory_space<vmem>>, %arg8: memref<1x128xf32, #tpu.memory_space<vmem>>, %arg9: memref<1x16x128xf32, #tpu.memory_space<vmem>>, %arg10: memref<20x128xf32, #tpu.memory_space<vmem>>, %arg11: memref<18x128xf32, #tpu.memory_space<vmem>>) attributes {dimension_semantics = [#tpu.dimension_semantics<parallel>, #tpu.dimension_semantics<parallel>], iteration_bounds = array<i64: 2, 1>, scalar_prefetch = 0 : i64, scratch_operands = 2 : i64, tpu.core_type = #tpu.core_type<tc>, window_params = [{transform_indices = @transform_0, window_bounds = array<i64: 1, 16, 128>}, {pipeline_mode = #tpu.pipeline_mode<synchronous>, transform_indices = @transform_1, window_bounds = array<i64: 3, 128, 128>}, {pipeline_mode = #tpu.pipeline_mode<synchronous>, transform_indices = @transform_2, window_bounds = array<i64: 128, 128>}, {pipeline_mode = #tpu.pipeline_mode<synchronous>, transform_indices = @transform_3, window_bounds = array<i64: 3, 128, 128>}, {pipeline_mode = #tpu.pipeline_mode<synchronous>, transform_indices = @transform_4, window_bounds = array<i64: 1, 128>}, {pipeline_mode = #tpu.pipeline_mode<synchronous>, transform_indices = @transform_5, window_bounds = array<i64: 1, 128>}, {pipeline_mode = #tpu.pipeline_mode<synchronous>, transform_indices = @transform_6, window_bounds = array<i64: 1, 128>}, {transform_indices = @transform_7, window_bounds = array<i64: 1, 16, 128>}]} {
    %c16_i32 = arith.constant 16 : i32
    %0 = arith.muli %arg1, %c16_i32 : i32
    %1 = tpu.assume_multiple %0, 8 : i32
    %c0 = arith.constant 0 : index
    %2 = arith.index_cast %1 : i32 to index
    %c0_0 = arith.constant 0 : index
    %3 = vector.load %arg2[%c0, %2, %c0_0] : memref<1x16x128xf32, #tpu.memory_space<vmem>>, vector<1x16x128xf32>
    %4 = vector.shape_cast %3 : vector<1x16x128xf32> to vector<16x128xf32>
    %c2 = arith.constant 2 : index
    %c0_1 = arith.constant 0 : index
    %5 = vector.load %arg10[%c2, %c0_1] : memref<20x128xf32, #tpu.memory_space<vmem>>, vector<16x128xf32>
    tpu.vector_store %arg10[%c2, %c0_1], %4 {strides = array<i32>} : memref<20x128xf32, #tpu.memory_space<vmem>>, vector<16x128xf32>,
    %c0_i32 = arith.constant 0 : i32
    %6 = arith.cmpi sgt, %arg1, %c0_i32 : i32
    %7 = arith.extui %6 : i1 to i32
    %c0_i32_2 = arith.constant 0 : i32
    %8 = arith.cmpi ne, %7, %c0_i32_2 : i32
    scf.if %8 {
      %c2_i32 = arith.constant 2 : i32
      %77 = arith.subi %1, %c2_i32 : i32
      %c0_65 = arith.constant 0 : index
      %78 = arith.index_cast %77 : i32 to index
      %c0_66 = arith.constant 0 : index
      %79 = vector.load %arg2[%c0_65, %78, %c0_66] : memref<1x16x128xf32, #tpu.memory_space<vmem>>, vector<1x2x128xf32>
      %80 = vector.shape_cast %79 : vector<1x2x128xf32> to vector<2x128xf32>
      %c0_67 = arith.constant 0 : index
      %c0_68 = arith.constant 0 : index
      %81 = vector.load %arg10[%c0_67, %c0_68] : memref<20x128xf32, #tpu.memory_space<vmem>>, vector<2x128xf32>
      tpu.vector_store %arg10[%c0_67, %c0_68], %80 {strides = array<i32>} : memref<20x128xf32, #tpu.memory_space<vmem>>, vector<2x128xf32>,
    } else {
    }
    %c0_i32_3 = arith.constant 0 : i32
    %9 = arith.cmpi eq, %arg1, %c0_i32_3 : i32
    %10 = arith.extui %9 : i1 to i32
    %c0_i32_4 = arith.constant 0 : i32
    %11 = arith.cmpi ne, %10, %c0_i32_4 : i32
    scf.if %11 {
      %cst_65 = arith.constant 0.000000e+00 : f32
      %77 = vector.broadcast %cst_65 : f32 to vector<2x128xf32>
      %c0_66 = arith.constant 0 : index
      %c0_67 = arith.constant 0 : index
      %78 = vector.load %arg10[%c0_66, %c0_67] : memref<20x128xf32, #tpu.memory_space<vmem>>, vector<2x128xf32>
      tpu.vector_store %arg10[%c0_66, %c0_67], %77 {strides = array<i32>} : memref<20x128xf32, #tpu.memory_space<vmem>>, vector<2x128xf32>,
    } else {
    }
    %c0_i32_5 = arith.constant 0 : i32
    %12 = arith.cmpi slt, %arg1, %c0_i32_5 : i32
    %13 = arith.extui %12 : i1 to i32
    %c0_i32_6 = arith.constant 0 : i32
    %14 = arith.cmpi ne, %13, %c0_i32_6 : i32
    scf.if %14 {
      %c16_i32_65 = arith.constant 16 : i32
      %77 = arith.addi %1, %c16_i32_65 : i32
      %c0_66 = arith.constant 0 : index
      %78 = arith.index_cast %77 : i32 to index
      %c0_67 = arith.constant 0 : index
      %79 = vector.load %arg2[%c0_66, %78, %c0_67] : memref<1x16x128xf32, #tpu.memory_space<vmem>>, vector<1x2x128xf32>
      %80 = vector.shape_cast %79 : vector<1x2x128xf32> to vector<2x128xf32>
      %c18 = arith.constant 18 : index
      %c0_68 = arith.constant 0 : index
      %81 = vector.load %arg10[%c18, %c0_68] : memref<20x128xf32, #tpu.memory_space<vmem>>, vector<2x128xf32>
      tpu.vector_store %arg10[%c18, %c0_68], %80 {strides = array<i32>} : memref<20x128xf32, #tpu.memory_space<vmem>>, vector<2x128xf32>,
    } else {
    }
    %c0_i32_7 = arith.constant 0 : i32
    %15 = arith.cmpi eq, %arg1, %c0_i32_7 : i32
    %16 = arith.extui %15 : i1 to i32
    %c0_i32_8 = arith.constant 0 : i32
    %17 = arith.cmpi ne, %16, %c0_i32_8 : i32
    scf.if %17 {
      %cst_65 = arith.constant 0.000000e+00 : f32
      %77 = vector.broadcast %cst_65 : f32 to vector<2x128xf32>
      %c18 = arith.constant 18 : index
      %c0_66 = arith.constant 0 : index
      %78 = vector.load %arg10[%c18, %c0_66] : memref<20x128xf32, #tpu.memory_space<vmem>>, vector<2x128xf32>
      tpu.vector_store %arg10[%c18, %c0_66], %77 {strides = array<i32>} : memref<20x128xf32, #tpu.memory_space<vmem>>, vector<2x128xf32>,
    } else {
    }
    %c0_9 = arith.constant 0 : index
    %c0_10 = arith.constant 0 : index
    %18 = vector.load %arg10[%c0_9, %c0_10] : memref<20x128xf32, #tpu.memory_space<vmem>>, vector<18x128xf32>
    %c0_11 = arith.constant 0 : index
    %c0_12 = arith.constant 0 : index
    %c0_13 = arith.constant 0 : index
    %19 = vector.load %arg3[%c0_11, %c0_12, %c0_13] : memref<3x128x128xf32, #tpu.memory_space<vmem>>, vector<1x128x128xf32>
    %20 = vector.shape_cast %19 : vector<1x128x128xf32> to vector<128x128xf32>
    %cst = arith.constant dense<0.000000e+00> : vector<18x128xf32>
    %21 = tpu.matmul %18, %20, %cst {dimension_numbers = #tpu.dot_dimension_numbers<[1], [0], [0], [1], [0, 0, 1, 1], [], []>} : vector<18x128xf32>, vector<128x128xf32>, vector<18x128xf32> -> vector<18x128xf32>
    %c1 = arith.constant 1 : index
    %c0_14 = arith.constant 0 : index
    %22 = vector.load %arg10[%c1, %c0_14] : memref<20x128xf32, #tpu.memory_space<vmem>>, vector<18x128xf32>
    %c1_15 = arith.constant 1 : index
    %c0_16 = arith.constant 0 : index
    %c0_17 = arith.constant 0 : index
    %23 = vector.load %arg3[%c1_15, %c0_16, %c0_17] : memref<3x128x128xf32, #tpu.memory_space<vmem>>, vector<1x128x128xf32>
    %24 = vector.shape_cast %23 : vector<1x128x128xf32> to vector<128x128xf32>
    %cst_18 = arith.constant dense<0.000000e+00> : vector<18x128xf32>
    %25 = tpu.matmul %22, %24, %cst_18 {dimension_numbers = #tpu.dot_dimension_numbers<[1], [0], [0], [1], [0, 0, 1, 1], [], []>} : vector<18x128xf32>, vector<128x128xf32>, vector<18x128xf32> -> vector<18x128xf32>
    %26 = arith.addf %21, %25 : vector<18x128xf32>
    %c2_19 = arith.constant 2 : index
    %c0_20 = arith.constant 0 : index
    %27 = vector.load %arg10[%c2_19, %c0_20] : memref<20x128xf32, #tpu.memory_space<vmem>>, vector<18x128xf32>
    %c2_21 = arith.constant 2 : index
    %c0_22 = arith.constant 0 : index
    %c0_23 = arith.constant 0 : index
    %28 = vector.load %arg3[%c2_21, %c0_22, %c0_23] : memref<3x128x128xf32, #tpu.memory_space<vmem>>, vector<1x128x128xf32>
    %29 = vector.shape_cast %28 : vector<1x128x128xf32> to vector<128x128xf32>
    %cst_24 = arith.constant dense<0.000000e+00> : vector<18x128xf32>
    %30 = tpu.matmul %27, %29, %cst_24 {dimension_numbers = #tpu.dot_dimension_numbers<[1], [0], [0], [1], [0, 0, 1, 1], [], []>} : vector<18x128xf32>, vector<128x128xf32>, vector<18x128xf32> -> vector<18x128xf32>
    %31 = arith.addf %26, %30 : vector<18x128xf32>
    %c0_25 = arith.constant 0 : index
    %c0_26 = arith.constant 0 : index
    %32 = vector.load %arg6[%c0_25, %c0_26] : memref<1x128xf32, #tpu.memory_space<vmem>>, vector<1x128xf32>
    %33 = vector.broadcast %32 : vector<1x128xf32> to vector<18x128xf32>
    %34 = arith.addf %31, %33 : vector<18x128xf32>
    %cst_27 = arith.constant 0.000000e+00 : f32
    %35 = vector.broadcast %cst_27 : f32 to vector<18x128xf32>
    %36 = arith.cmpf oge, %34, %35 : vector<18x128xf32>
    %cst_28 = arith.constant 2.000000e-01 : f32
    %37 = vector.broadcast %cst_28 : f32 to vector<18x128xf32>
    %38 = arith.mulf %37, %34 : vector<18x128xf32>
    %39 = arith.select %36, %34, %38 : vector<18x128xi1>, vector<18x128xf32>
    %c0_29 = arith.constant 0 : index
    %c0_30 = arith.constant 0 : index
    %40 = vector.load %arg4[%c0_29, %c0_30] : memref<128x128xf32, #tpu.memory_space<vmem>>, vector<128x128xf32>
    %cst_31 = arith.constant dense<0.000000e+00> : vector<18x128xf32>
    %41 = tpu.matmul %39, %40, %cst_31 {dimension_numbers = #tpu.dot_dimension_numbers<[1], [0], [0], [1], [0, 0, 1, 1], [], []>} : vector<18x128xf32>, vector<128x128xf32>, vector<18x128xf32> -> vector<18x128xf32>
    %c0_32 = arith.constant 0 : index
    %c0_33 = arith.constant 0 : index
    %42 = vector.load %arg7[%c0_32, %c0_33] : memref<1x128xf32, #tpu.memory_space<vmem>>, vector<1x128xf32>
    %43 = vector.broadcast %42 : vector<1x128xf32> to vector<18x128xf32>
    %44 = arith.addf %41, %43 : vector<18x128xf32>
    %cst_34 = arith.constant 0.000000e+00 : f32
    %45 = vector.broadcast %cst_34 : f32 to vector<18x128xf32>
    %46 = arith.cmpf oge, %44, %45 : vector<18x128xf32>
    %cst_35 = arith.constant 2.000000e-01 : f32
    %47 = vector.broadcast %cst_35 : f32 to vector<18x128xf32>
    %48 = arith.mulf %47, %44 : vector<18x128xf32>
    %49 = arith.select %46, %44, %48 : vector<18x128xi1>, vector<18x128xf32>
    %c0_36 = arith.constant 0 : index
    %c0_37 = arith.constant 0 : index
    %50 = vector.load %arg11[%c0_36, %c0_37] : memref<18x128xf32, #tpu.memory_space<vmem>>, vector<18x128xf32>
    tpu.vector_store %arg11[%c0_36, %c0_37], %49 {strides = array<i32>} : memref<18x128xf32, #tpu.memory_space<vmem>>, vector<18x128xf32>,
    %c0_i32_38 = arith.constant 0 : i32
    %51 = arith.cmpi eq, %arg1, %c0_i32_38 : i32
    %52 = arith.extui %51 : i1 to i32
    %c0_i32_39 = arith.constant 0 : i32
    %53 = arith.cmpi ne, %52, %c0_i32_39 : i32
    scf.if %53 {
      %cst_65 = arith.constant 0.000000e+00 : f32
      %77 = vector.broadcast %cst_65 : f32 to vector<1x128xf32>
      %c0_66 = arith.constant 0 : index
      %c0_67 = arith.constant 0 : index
      %78 = vector.load %arg11[%c0_66, %c0_67] : memref<18x128xf32, #tpu.memory_space<vmem>>, vector<1x128xf32>
      tpu.vector_store %arg11[%c0_66, %c0_67], %77 {strides = array<i32>} : memref<18x128xf32, #tpu.memory_space<vmem>>, vector<1x128xf32>,
    } else {
    }
    %c0_i32_40 = arith.constant 0 : i32
    %54 = arith.cmpi eq, %arg1, %c0_i32_40 : i32
    %55 = arith.extui %54 : i1 to i32
    %c0_i32_41 = arith.constant 0 : i32
    %56 = arith.cmpi ne, %55, %c0_i32_41 : i32
    scf.if %56 {
      %cst_65 = arith.constant 0.000000e+00 : f32
      %77 = vector.broadcast %cst_65 : f32 to vector<1x128xf32>
      %c17 = arith.constant 17 : index
      %c0_66 = arith.constant 0 : index
      %78 = vector.load %arg11[%c17, %c0_66] : memref<18x128xf32, #tpu.memory_space<vmem>>, vector<1x128xf32>
      tpu.vector_store %arg11[%c17, %c0_66], %77 {strides = array<i32>} : memref<18x128xf32, #tpu.memory_space<vmem>>, vector<1x128xf32>,
    } else {
    }
    %c0_42 = arith.constant 0 : index
    %c0_43 = arith.constant 0 : index
    %57 = vector.load %arg11[%c0_42, %c0_43] : memref<18x128xf32, #tpu.memory_space<vmem>>, vector<16x128xf32>
    %c0_44 = arith.constant 0 : index
    %c0_45 = arith.constant 0 : index
    %c0_46 = arith.constant 0 : index
    %58 = vector.load %arg5[%c0_44, %c0_45, %c0_46] : memref<3x128x128xf32, #tpu.memory_space<vmem>>, vector<1x128x128xf32>
    %59 = vector.shape_cast %58 : vector<1x128x128xf32> to vector<128x128xf32>
    %cst_47 = arith.constant dense<0.000000e+00> : vector<16x128xf32>
    %60 = tpu.matmul %57, %59, %cst_47 {dimension_numbers = #tpu.dot_dimension_numbers<[1], [0], [0], [1], [0, 0, 1, 1], [], []>} : vector<16x128xf32>, vector<128x128xf32>, vector<16x128xf32> -> vector<16x128xf32>
    %c1_48 = arith.constant 1 : index
    %c0_49 = arith.constant 0 : index
    %61 = vector.load %arg11[%c1_48, %c0_49] : memref<18x128xf32, #tpu.memory_space<vmem>>, vector<16x128xf32>
    %c1_50 = arith.constant 1 : index
    %c0_51 = arith.constant 0 : index
    %c0_52 = arith.constant 0 : index
    %62 = vector.load %arg5[%c1_50, %c0_51, %c0_52] : memref<3x128x128xf32, #tpu.memory_space<vmem>>, vector<1x128x128xf32>
    %63 = vector.shape_cast %62 : vector<1x128x128xf32> to vector<128x128xf32>
    %cst_53 = arith.constant dense<0.000000e+00> : vector<16x128xf32>
    %64 = tpu.matmul %61, %63, %cst_53 {dimension_numbers = #tpu.dot_dimension_numbers<[1], [0], [0], [1], [0, 0, 1, 1], [], []>} : vector<16x128xf32>, vector<128x128xf32>, vector<16x128xf32> -> vector<16x128xf32>
    %65 = arith.addf %60, %64 : vector<16x128xf32>
    %c2_54 = arith.constant 2 : index
    %c0_55 = arith.constant 0 : index
    %66 = vector.load %arg11[%c2_54, %c0_55] : memref<18x128xf32, #tpu.memory_space<vmem>>, vector<16x128xf32>
    %c2_56 = arith.constant 2 : index
    %c0_57 = arith.constant 0 : index
    %c0_58 = arith.constant 0 : index
    %67 = vector.load %arg5[%c2_56, %c0_57, %c0_58] : memref<3x128x128xf32, #tpu.memory_space<vmem>>, vector<1x128x128xf32>
    %68 = vector.shape_cast %67 : vector<1x128x128xf32> to vector<128x128xf32>
    %cst_59 = arith.constant dense<0.000000e+00> : vector<16x128xf32>
    %69 = tpu.matmul %66, %68, %cst_59 {dimension_numbers = #tpu.dot_dimension_numbers<[1], [0], [0], [1], [0, 0, 1, 1], [], []>} : vector<16x128xf32>, vector<128x128xf32>, vector<16x128xf32> -> vector<16x128xf32>
    %70 = arith.addf %65, %69 : vector<16x128xf32>
    %c0_60 = arith.constant 0 : index
    %c0_61 = arith.constant 0 : index
    %71 = vector.load %arg8[%c0_60, %c0_61] : memref<1x128xf32, #tpu.memory_space<vmem>>, vector<1x128xf32>
    %72 = vector.broadcast %71 : vector<1x128xf32> to vector<16x128xf32>
    %73 = arith.addf %70, %72 : vector<16x128xf32>
    %c0_62 = arith.constant 0 : index
    %c0_63 = arith.constant 0 : index
    %c0_64 = arith.constant 0 : index
    %74 = vector.load %arg9[%c0_62, %c0_63, %c0_64] : memref<1x16x128xf32, #tpu.memory_space<vmem>>, vector<1x16x128xf32>
    %75 = vector.shape_cast %74 : vector<1x16x128xf32> to vector<16x128xf32>
    %76 = vector.shape_cast %73 : vector<16x128xf32> to vector<1x16x128xf32>
    tpu.vector_store %arg9[%c0_62, %c0_63, %c0_64], %76 {strides = array<i32>} : memref<1x16x128xf32, #tpu.memory_space<vmem>>, vector<1x16x128xf32>,
    return
  }
  func.func @transform_0(%arg0: i32, %arg1: i32) -> (i32, i32, i32) {
    %c0_i32 = arith.constant 0 : i32
    %c0_i32_0 = arith.constant 0 : i32
    %c0_i32_1 = arith.constant 0 : i32
    return %arg0, %c0_i32, %c0_i32_0 : i32, i32, i32
  }
  func.func @transform_1(%arg0: i32, %arg1: i32) -> (i32, i32, i32) {
    %c0_i32 = arith.constant 0 : i32
    %c0_i32_0 = arith.constant 0 : i32
    %c0_i32_1 = arith.constant 0 : i32
    %c0_i32_2 = arith.constant 0 : i32
    return %c0_i32, %c0_i32_0, %c0_i32_1 : i32, i32, i32
  }
  func.func @transform_2(%arg0: i32, %arg1: i32) -> (i32, i32) {
    %c0_i32 = arith.constant 0 : i32
    %c0_i32_0 = arith.constant 0 : i32
    %c0_i32_1 = arith.constant 0 : i32
    return %c0_i32, %c0_i32_0 : i32, i32
  }
  func.func @transform_3(%arg0: i32, %arg1: i32) -> (i32, i32, i32) {
    %c0_i32 = arith.constant 0 : i32
    %c0_i32_0 = arith.constant 0 : i32
    %c0_i32_1 = arith.constant 0 : i32
    %c0_i32_2 = arith.constant 0 : i32
    return %c0_i32, %c0_i32_0, %c0_i32_1 : i32, i32, i32
  }
  func.func @transform_4(%arg0: i32, %arg1: i32) -> (i32, i32) {
    %c0_i32 = arith.constant 0 : i32
    %c0_i32_0 = arith.constant 0 : i32
    %c0_i32_1 = arith.constant 0 : i32
    return %c0_i32, %c0_i32_0 : i32, i32
  }
  func.func @transform_5(%arg0: i32, %arg1: i32) -> (i32, i32) {
    %c0_i32 = arith.constant 0 : i32
    %c0_i32_0 = arith.constant 0 : i32
    %c0_i32_1 = arith.constant 0 : i32
    return %c0_i32, %c0_i32_0 : i32, i32
  }
  func.func @transform_6(%arg0: i32, %arg1: i32) -> (i32, i32) {
    %c0_i32 = arith.constant 0 : i32
    %c0_i32_0 = arith.constant 0 : i32
    %c0_i32_1 = arith.constant 0 : i32
    return %c0_i32, %c0_i32_0 : i32, i32
  }
  func.func @transform_7(%arg0: i32, %arg1: i32) -> (i32, i32, i32) {
    %c0_i32 = arith.constant 0 : i32
    %c0_i32_0 = arith.constant 0 : i32
    return %arg0, %arg1, %c0_i32 : i32, i32, i32
  }
}

</mosaic_0001>

<bundles_post_ra>
// kernel: tile.18
= control target key start
LH: loop header
LB: loop body
LE: loop exit
PB: predicated region body
PF: predicated region fallthrough
CT: control target
= control target key end

     0   :  { %s28_s0 = inlined_call_operand.vmem [shape: f32[8], index: 0, kind: input, shape index: {}]   ;;  %s29_s1 = inlined_call_operand.vmem [shape: f32[16,8], index: 1, kind: output, shape index: {}]  }
   0x1   :  { %v4_v0 = vld [vmem:[%s28_s0] ss:$0 sm:$0xff] }
   0x2   :  { %5 = vst [vmem:[%s29_s1] sm:$0xff] %v4_v0 }
   0x3   :  { %8 = vst [vmem:[%s29_s1 + $0x8] sm:$0xff] %v4_v0 }

// kernel: dense_subnet_forward_nchw.1
= control target key start
LH: loop header
LB: loop body
LE: loop exit
PB: predicated region body
PF: predicated region fallthrough
CT: control target
= control target key end

     0   :  { %s962_s24 = smov 0   ;;  %s964_s25 = smov 0   ;;  %s1365_s0 = inlined_call_operand.vmem [shape: f32[2,16,128], index: 0, kind: input, shape index: {}]   ;;  %s1366_s1 = inlined_call_operand.vmem [shape: f32[3,128,128], index: 1, kind: input, shape index: {}]   ;;  %s1367_s2 = inlined_call_operand.vmem [shape: f32[128,128], index: 2, kind: input, shape index: {}]   ;;  %s1368_s3 = inlined_call_operand.vmem [shape: f32[3,128,128], index: 3, kind: input, shape index: {}]   ;;  %s1369_s4 = inlined_call_operand.vmem [shape: f32[1,128], index: 4, kind: input, shape index: {}]   ;;  %s1370_s5 = inlined_call_operand.vmem [shape: f32[1,128], index: 5, kind: input, shape index: {}]   ;;  %s1371_s6 = inlined_call_operand.vmem [shape: f32[1,128], index: 6, kind: input, shape index: {}]   ;;  %s1372_s7 = inlined_call_operand.vmem [shape: f32[2,16,128], index: 7, kind: output, shape index: {}]  }
   0x1   :  { %s966_s26 = smov 0  }
   0x2 LB: > { %s29_s27 = sadd.s32 1, %s915_s25  ;;  %p778_p0 = scmp.ge.s32.totalorder %s919_s26, 1  ;;  %s919_s26 = sphi %s966_s26, %s17_s26   ;;  %s915_s25 = sphi %s964_s25, %s1374_s25   ;;  %s911_s24 = sphi %s962_s24, %s1373_s24  }
   0x3   : > { %p31_p1 = scmp.ge.s32.totalorder %s29_s27, 2  ;;  %p251_p2 = scmp.lt.s32.totalorder %s919_s26, 3 }
   0x5   : > { %s1376_s27 = smov (%p31_p1, %s29_s27), 0  ;;  %p252_p3 = pnand %p778_p0, %p251_p2 }
   0x6   : > { %p287_p4 = scmp.lt.s32.totalorder (!%p252_p3), %s911_s24, 1 }
   0x7   : > { %255 = sbr.rel (%p252_p3) target bundleno = 483 (0x1e3), region = 48 }
   0xc   : > { %v816_v0 = vld [vmem:[%s1366_s1 + $0x178] sm:$0xff]  ;;  %v815_v1 = vld [vmem:[%s1366_s1 + $0x170] sm:$0xff]  ;;  %v921_v5 = vmov 0.0   ;;  %v814_v6 = vld [vmem:[%s1366_s1 + $0x168] sm:$0xff]  ;;  %s1378_s24 = smov (!%p287_p4, %s911_s24), 1 }
   0xd   : > { %v800_v2 = vld [vmem:[%s1366_s1 + $0xf8] sm:$0xff]  ;;  %444 = vmatpush.msra.mxu2 %v816_v0  ;;  %v799_v4 = vld [vmem:[%s1366_s1 + $0xf0] sm:$0xff]  ;;  %320 = vst [vmem:[#allocation2] sm:$0x3] %v921_v5  ;;  %v798_v8 = vld [vmem:[%s1366_s1 + $0xe8] sm:$0xff]  ;;  %s851_s20 = sshll.u32 %s1378_s24, 4 }
   0xe   : > { %372 = vmatpush.msra.mxu0 %v800_v2  ;;  %v351_v3 = vld [vmem:[%s1366_s1 + $0x78] sm:$0xff]  ;;  %v350_v7 = vld [vmem:[%s1366_s1 + $0x70] sm:$0xff]  ;;  %332 = vst [vmem:[#allocation2 + $0x12] sm:$0x3] %v921_v5  ;;  %v349_v9 = vld [vmem:[%s1366_s1 + $0x68] sm:$0xff]  ;;  %s291_s12 = scalar_lea.vmem %s1365_s0, %s851_s20  ;;  %s300_s28 = scalar_lea.vmem %s1372_s7, %s851_s20 }
   0xf   : > { %398 = vmatpush.msra.mxu1 %v351_v3  ;;  %445 = vmatpush.msra.mxu2 %v815_v1  ;;  %v813_v10 = vld [vmem:[%s1366_s1 + $0x160] sm:$0xff]  ;;  %v812_v13 = vld [vmem:[%s1366_s1 + $0x158] sm:$0xff]  ;;  %v811_v16 = vld [vmem:[%s1366_s1 + $0x150] sm:$0xff] }
  0x10   : > { %373 = vmatpush.msra.mxu0 %v799_v4  ;;  %v797_v11 = vld [vmem:[%s1366_s1 + $0xe0] sm:$0xff]  ;;  %v796_v14 = vld [vmem:[%s1366_s1 + $0xd8] sm:$0xff]  ;;  %v795_v17 = vld [vmem:[%s1366_s1 + $0xd0] sm:$0xff] }
  0x11   : > { %399 = vmatpush.msra.mxu1 %v350_v7  ;;  %446 = vmatpush.msra.mxu2 %v814_v6  ;;  %v348_v12 = vld [vmem:[%s1366_s1 + $0x60] sm:$0xff]  ;;  %v347_v15 = vld [vmem:[%s1366_s1 + $0x58] sm:$0xff]  ;;  %v346_v18 = vld [vmem:[%s1366_s1 + $0x50] sm:$0xff] }
  0x12   : > { %374 = vmatpush.msra.mxu0 %v798_v8  ;;  %v810_v19 = vld [vmem:[%s1366_s1 + $0x148] sm:$0xff]  ;;  %v809_v22 = vld [vmem:[%s1366_s1 + $0x140] sm:$0xff]  ;;  %v808_v25 = vld [vmem:[%s1366_s1 + $0x138] sm:$0xff] }
  0x13   : > { %400 = vmatpush.msra.mxu1 %v349_v9  ;;  %447 = vmatpush.msra.mxu2 %v813_v10  ;;  %v794_v20 = vld [vmem:[%s1366_s1 + $0xc8] sm:$0xff]  ;;  %v793_v23 = vld [vmem:[%s1366_s1 + $0xc0] sm:$0xff]  ;;  %v792_v26 = vld [vmem:[%s1366_s1 + $0xb8] sm:$0xff] }
  0x14   : > { %375 = vmatpush.msra.mxu0 %v797_v11  ;;  %v345_v21 = vld [vmem:[%s1366_s1 + $0x48] sm:$0xff]  ;;  %v344_v24 = vld [vmem:[%s1366_s1 + $0x40] sm:$0xff]  ;;  %v343_v28 = vld [vmem:[%s1366_s1 + $0x38] sm:$0xff] }
  0x15   : > { %401 = vmatpush.msra.mxu1 %v348_v12  ;;  %448 = vmatpush.msra.mxu2 %v812_v13  ;;  %v1074_v27 = vld [vmem:[%s291_s12] sm:$0xff]  ;;  %v807_v29 = vld [vmem:[%s1366_s1 + $0x130] sm:$0xff]  ;;  %v1086_v31 = vld [vmem:[%s291_s12 + $0x8] sm:$0xff] }
  0x16   : > { %376 = vmatpush.msra.mxu0 %v796_v14  ;;  %306 = vst [vmem:[#allocation2 + $0x2] sm:$0xff] %v1074_v27  ;;  %v791_v30 = vld [vmem:[%s1366_s1 + $0xb0] sm:$0xff]  ;;  %v504_v33 = vld [vmem:[%s1367_s2 + $0x78] sm:$0xff]  ;;  %v806_v35 = vld [vmem:[%s1366_s1 + $0x128] sm:$0xff] }
  0x17   : > { %402 = vmatpush.msra.mxu1 %v347_v15  ;;  %449 = vmatpush.msra.mxu2 %v811_v16  ;;  %v342_v32 = vld [vmem:[%s1366_s1 + $0x30] sm:$0xff]  ;;  %307 = vst [vmem:[#allocation2 + $0xa] sm:$0xff] %v1086_v31  ;;  %v790_v36 = vld [vmem:[%s1366_s1 + $0xa8] sm:$0xff]  ;;  %v805_v37 = vld [vmem:[%s1366_s1 + $0x120] sm:$0xff] }
  0x18   : > { %377 = vmatpush.msra.mxu0 %v795_v17  ;;  %v503_v34 = vld [vmem:[%s1367_s2 + $0x70] sm:$0xff]  ;;  %509 = vmatpush.msra.mxu3 %v504_v33  ;;  %v341_v38 = vld [vmem:[%s1366_s1 + $0x28] sm:$0xff]  ;;  %v789_v40 = vld [vmem:[%s1366_s1 + $0xa0] sm:$0xff] }
  0x19   : > { %403 = vmatpush.msra.mxu1 %v346_v18  ;;  %450 = vmatpush.msra.mxu2 %v810_v19  ;;  %v502_v39 = vld [vmem:[%s1367_s2 + $0x68] sm:$0xff]  ;;  %v340_v41 = vld [vmem:[%s1366_s1 + $0x20] sm:$0xff]  ;;  %v804_v43 = vld [vmem:[%s1366_s1 + $0x118] sm:$0xff] }
  0x1a   : > { %378 = vmatpush.msra.mxu0 %v794_v20  ;;  %510 = vmatpush.msra.mxu3 %v503_v34  ;;  %v501_v42 = vld [vmem:[%s1367_s2 + $0x60] sm:$0xff]  ;;  %v788_v44 = vld [vmem:[%s1366_s1 + $0x98] sm:$0xff]  ;;  %v803_v47 = vld [vmem:[%s1366_s1 + $0x110] sm:$0xff] }
  0x1b   : > { %404 = vmatpush.msra.mxu1 %v345_v21  ;;  %451 = vmatpush.msra.mxu2 %v809_v22  ;;  %v339_v45 = vld [vmem:[%s1366_s1 + $0x18] sm:$0xff]  ;;  %v787_v48 = vld [vmem:[%s1366_s1 + $0x90] sm:$0xff]  ;;  %v802_v51 = vld [vmem:[%s1366_s1 + $0x108] sm:$0xff] }
  0x1c   : > { %379 = vmatpush.msra.mxu0 %v793_v23  ;;  %511 = vmatpush.msra.mxu3 %v502_v39  ;;  %v500_v46 = vld [vmem:[%s1367_s2 + $0x58] sm:$0xff]  ;;  %v338_v49 = vld [vmem:[%s1366_s1 + $0x10] sm:$0xff]  ;;  %v786_v52 = vld [vmem:[%s1366_s1 + $0x88] sm:$0xff] }
  0x1d   : > { %405 = vmatpush.msra.mxu1 %v344_v24  ;;  %452 = vmatpush.msra.mxu2 %v808_v25  ;;  %v499_v50 = vld [vmem:[%s1367_s2 + $0x50] sm:$0xff]  ;;  %v337_v53 = vld [vmem:[%s1366_s1 + $0x8] sm:$0xff]  ;;  %v801_v55 = vld [vmem:[%s1366_s1 + $0x100] sm:$0xff] }
  0x1e   : > { %380 = vmatpush.msra.mxu0 %v792_v26  ;;  %512 = vmatpush.msra.mxu3 %v501_v42  ;;  %v498_v54 = vld [vmem:[%s1367_s2 + $0x48] sm:$0xff]  ;;  %v785_v56 = vld [vmem:[%s1366_s1 + $0x80] sm:$0xff]  ;;  %v496_v61 = vld [vmem:[%s1367_s2 + $0x38] sm:$0xff] }
  0x1f   : > { %406 = vmatpush.msra.mxu1 %v343_v28  ;;  %453 = vmatpush.msra.mxu2 %v807_v29  ;;  %v336_v57 = vld [vmem:[%s1366_s1] sm:$0xff]  ;;  %v495_v62 = vld [vmem:[%s1367_s2 + $0x30] sm:$0xff]  ;;  %v494_v63 = vld [vmem:[%s1367_s2 + $0x28] sm:$0xff] }
  0x20   : > { %381 = vmatpush.msra.mxu0 %v791_v30  ;;  %513 = vmatpush.msra.mxu3 %v500_v46  ;;  %v352_v58 = vld [vmem:[#allocation2 + $0x1] sm:$0xff]  ;;  %v353_v0 = vld [vmem:[#allocation2 + $0x9] sm:$0xff]  ;;  %v426_v2 = vld [vmem:[#allocation2 + $0x12] sm:$0x3] }
  0x21   : > { %407 = vmatpush.msra.mxu1 %v342_v32  ;;  %454 = vmatpush.msra.mxu2 %v806_v35  ;;  %v333_v59 = vld [vmem:[#allocation2] sm:$0xff]  ;;  %v334_v1 = vld [vmem:[#allocation2 + $0x8] sm:$0xff]  ;;  %v354_v3 = vld [vmem:[#allocation2 + $0x11] sm:$0x3] }
  0x22   : > { %382 = vmatpush.msra.mxu0 %v790_v36  ;;  %514 = vmatpush.msra.mxu3 %v499_v50  ;;  %v497_v60 = vld [vmem:[%s1367_s2 + $0x40] sm:$0xff]  ;;  %v335_v4 = vld [vmem:[#allocation2 + $0x10] sm:$0x3]  ;;  %v492_v7 = vld [vmem:[%s1367_s2 + $0x18] sm:$0xff] }
  0x23   : > { %408 = vmatpush.msra.mxu1 %v341_v38  ;;  %455 = vmatpush.msra.mxu2 %v805_v37  ;;  %v493_v6 = vld [vmem:[%s1367_s2 + $0x20] sm:$0xff]  ;;  %v491_v8 = vld [vmem:[%s1367_s2 + $0x10] sm:$0xff]  ;;  %v490_v9 = vld [vmem:[%s1367_s2 + $0x8] sm:$0xff] }
  0x24   : > { %383 = vmatpush.msra.mxu0 %v789_v40  ;;  %515 = vmatpush.msra.mxu3 %v498_v54  ;;  %v489_v10 = vld [vmem:[%s1367_s2] sm:$0xff]  ;;  %v569_v11 = vld [vmem:[%s1368_s3 + $0x78] sm:$0xff]  ;;  %v568_v12 = vld [vmem:[%s1368_s3 + $0x70] sm:$0xff] }
  0x25   : > { %409 = vmatpush.msra.mxu1 %v340_v41  ;;  %456 = vmatpush.msra.mxu2 %v804_v43  ;;  %v832_v13 = vld [vmem:[%s1368_s3 + $0xf8] sm:$0xff]  ;;  %v567_v15 = vld [vmem:[%s1368_s3 + $0x68] sm:$0xff]  ;;  %v831_v16 = vld [vmem:[%s1368_s3 + $0xf0] sm:$0xff] }
  0x26   : > { %384 = vmatpush.msra.mxu0 %v788_v44  ;;  %516 = vmatpush.msra.mxu3 %v497_v60  ;;  %v848_v14 = vld [vmem:[%s1368_s3 + $0x178] sm:$0xff]  ;;  %v847_v17 = vld [vmem:[%s1368_s3 + $0x170] sm:$0xff]  ;;  %v830_v20 = vld [vmem:[%s1368_s3 + $0xe8] sm:$0xff] }
  0x27   : > { %410 = vmatpush.msra.mxu1 %v339_v45  ;;  %457 = vmatpush.msra.mxu2 %v803_v47  ;;  %v846_v21 = vld [vmem:[%s1368_s3 + $0x168] sm:$0xff]  ;;  %v566_v22 = vld [vmem:[%s1368_s3 + $0x60] sm:$0xff]  ;;  %v565_v26 = vld [vmem:[%s1368_s3 + $0x58] sm:$0xff] }
  0x28   : > { %385 = vmatpush.msra.mxu0 %v787_v48  ;;  %517 = vmatpush.msra.mxu3 %v496_v61  ;;  %v829_v24 = vld [vmem:[%s1368_s3 + $0xe0] sm:$0xff]  ;;  %v828_v28 = vld [vmem:[%s1368_s3 + $0xd8] sm:$0xff]  ;;  %v563_v33 = vld [vmem:[%s1368_s3 + $0x48] sm:$0xff] }
  0x29   : > { %411 = vmatpush.msra.mxu1 %v338_v49  ;;  %458 = vmatpush.msra.mxu2 %v802_v51  ;;  %v845_v25 = vld [vmem:[%s1368_s3 + $0x160] sm:$0xff]  ;;  %v844_v29 = vld [vmem:[%s1368_s3 + $0x158] sm:$0xff]  ;;  %v559_v60 = vld [vmem:[%s1368_s3 + $0x28] sm:$0xff] }
  0x2a   : > { %386 = vmatpush.msra.mxu0 %v786_v52  ;;  %518 = vmatpush.msra.mxu3 %v495_v62  ;;  %v562_v37 = vld [vmem:[%s1368_s3 + $0x40] sm:$0xff]  ;;  %v561_v54 = vld [vmem:[%s1368_s3 + $0x38] sm:$0xff] }
  0x2b   : > { %412 = vmatpush.msra.mxu1 %v337_v53  ;;  %459 = vmatpush.msra.mxu2 %v801_v55  ;;  %v827_v55 = vld [vmem:[%s1368_s3 + $0xd0] sm:$0xff]  ;;  %v825_v61 = vld [vmem:[%s1368_s3 + $0xc0] sm:$0xff] }
  0x2c   : > { %387 = vmatpush.msra.mxu0 %v785_v56  ;;  %460 = vmatmul.f32.vlgmr.msra.gmra.mxu2 %v1074_v27  ;;  %v894_v27 = vld [vmem:[%s1369_s4] ss:$0 sm:$0xff]  ;;  %v843_v56 = vld [vmem:[%s1368_s3 + $0x150] sm:$0xff] }
  0x2d   : > { %413 = vmatpush.msra.mxu1 %v336_v57  ;;  %388 = vmatmul.f32.vlgmr.msra.gmra.mxu0 %v352_v58  ;;  %v560_v57 = vld [vmem:[%s1368_s3 + $0x30] sm:$0xff]  ;;  %v826_v58 = vld [vmem:[%s1368_s3 + $0xc8] sm:$0xff]  ;;  %v841_v62 = vld [vmem:[%s1368_s3 + $0x140] sm:$0xff] }
  0x2e   : > { %414 = vmatmul.f32.vlgmr.msra.gmra.mxu1 %v333_v59  ;;  %519 = vmatpush.msra.mxu3 %v494_v63  ;;  %v842_v59 = vld [vmem:[%s1368_s3 + $0x148] sm:$0xff]  ;;  %v558_v63 = vld [vmem:[%s1368_s3 + $0x20] sm:$0xff] }
  0x2f   : > { %612 = vmatpush.msrb.mxu1 %v569_v11  ;;  %589 = vmatpush.msrb.mxu0 %v832_v13  ;;  %v837_v11 = vld [vmem:[%s1368_s3 + $0x120] sm:$0xff] }
  0x30   : > { %520 = vmatpush.msra.mxu3 %v493_v6  ;;  %654 = vmatpush.msrb.mxu2 %v848_v14  ;;  %v556_v6 = vld [vmem:[%s1368_s3 + $0x10] sm:$0xff]  ;;  %v836_v14 = vld [vmem:[%s1368_s3 + $0x118] sm:$0xff] }
  0x31   : > { %613 = vmatpush.msrb.mxu1 %v568_v12  ;;  %590 = vmatpush.msrb.mxu0 %v831_v16  ;;  %v554_v12 = vld [vmem:[%s1368_s3] sm:$0xff] }
  0x32   : > { %521 = vmatpush.msra.mxu3 %v492_v7  ;;  %655 = vmatpush.msrb.mxu2 %v847_v17  ;;  %v822_v7 = vld [vmem:[%s1368_s3 + $0xa8] sm:$0xff] }
  0x33   : > { %614 = vmatpush.msrb.mxu1 %v567_v15  ;;  %591 = vmatpush.msrb.mxu0 %v830_v20  ;;  %v819_v15 = vld [vmem:[%s1368_s3 + $0x90] sm:$0xff]  ;;  %v818_v17 = vld [vmem:[%s1368_s3 + $0x88] sm:$0xff] }
  0x34   : > { %463 = vmatmul.f32.gmra.mxu2 %v1086_v31  ;;  %522 = vmatpush.msra.mxu3 %v491_v8  ;;  %v564_v31 = vld [vmem:[%s1368_s3 + $0x50] sm:$0xff]  ;;  %v838_v8 = vld [vmem:[%s1368_s3 + $0x128] sm:$0xff] }
  0x35   : > { %391 = vmatmul.f32.gmra.mxu0 %v353_v0  ;;  %656 = vmatpush.msrb.mxu2 %v846_v21  ;;  %v824_v0 = vld [vmem:[%s1368_s3 + $0xb8] sm:$0xff]  ;;  %v895_v21 = vld [vmem:[%s1370_s5] ss:$0 sm:$0xff] }
  0x36   : > { %417 = vmatmul.f32.gmra.mxu1 %v334_v1  ;;  %523 = vmatpush.msra.mxu3 %v490_v9  ;;  %v840_v1 = vld [vmem:[%s1368_s3 + $0x138] sm:$0xff]  ;;  %v555_v9 = vld [vmem:[%s1368_s3 + $0x8] sm:$0xff] }
  0x37   : > { %615 = vmatpush.msrb.mxu1 %v566_v22  ;;  %592 = vmatpush.msrb.mxu0 %v829_v24 }
  0x38   : > { %524 = vmatpush.msra.mxu3 %v489_v10  ;;  %657 = vmatpush.msrb.mxu2 %v845_v25  ;;  %v821_v10 = vld [vmem:[%s1368_s3 + $0xa0] sm:$0xff] }
  0x39   : > { %616 = vmatpush.msrb.mxu1 %v565_v26  ;;  %593 = vmatpush.msrb.mxu0 %v828_v28 }
  0x3a   : > { %853 = vmatpush.msrb.mxu3 %v832_v13  ;;  %658 = vmatpush.msrb.mxu2 %v844_v29  ;;  %v820_v13 = vld [vmem:[%s1368_s3 + $0x98] sm:$0xff] }
  0x3b   : > { %617 = vmatpush.msrb.mxu1 %v564_v31  ;;  %594 = vmatpush.msrb.mxu0 %v827_v55 }
  0x3c   : > { %466 = vmatmul.f32.gmra.mxu2 %v426_v2  ;;  %854 = vmatpush.msrb.mxu3 %v831_v16  ;;  %v557_v2 = vld [vmem:[%s1368_s3 + $0x18] sm:$0xff]  ;;  %v835_v16 = vld [vmem:[%s1368_s3 + $0x110] sm:$0xff] }
  0x3d   : > { %394 = vmatmul.f32.gmra.mxu0 %v354_v3  ;;  %618 = vmatpush.msrb.mxu1 %v563_v33  ;;  %v823_v3 = vld [vmem:[%s1368_s3 + $0xb0] sm:$0xff] }
  0x3e   : > { %420 = vmatmul.f32.gmra.mxu1 %v335_v4  ;;  %855 = vmatpush.msrb.mxu3 %v830_v20  ;;  %v839_v4 = vld [vmem:[%s1368_s3 + $0x130] sm:$0xff]  ;;  %v833_v20 = vld [vmem:[%s1368_s3 + $0x100] sm:$0xff] }
  0x3f   : > { %619 = vmatpush.msrb.mxu1 %v562_v37  ;;  %659 = vmatpush.msrb.mxu2 %v843_v56 }
  0x40   : > { %856 = vmatpush.msrb.mxu3 %v829_v24  ;;  %595 = vmatpush.msrb.mxu0 %v826_v58 }
  0x41   : > { %620 = vmatpush.msrb.mxu1 %v561_v54  ;;  %660 = vmatpush.msrb.mxu2 %v842_v59 }
  0x42   : > { %857 = vmatpush.msrb.mxu3 %v828_v28  ;;  %596 = vmatpush.msrb.mxu0 %v825_v61 }
  0x43   : > { %621 = vmatpush.msrb.mxu1 %v560_v57  ;;  %661 = vmatpush.msrb.mxu2 %v841_v62 }
  0x44   : > { %858 = vmatpush.msrb.mxu3 %v827_v55  ;;  %597 = vmatpush.msrb.mxu0 %v824_v0 }
  0x45   : > { %622 = vmatpush.msrb.mxu1 %v559_v60  ;;  %662 = vmatpush.msrb.mxu2 %v840_v1 }
  0x46   : > { %859 = vmatpush.msrb.mxu3 %v826_v58  ;;  %598 = vmatpush.msrb.mxu0 %v823_v3 }
  0x47   : > { %623 = vmatpush.msrb.mxu1 %v558_v63  ;;  %663 = vmatpush.msrb.mxu2 %v839_v4 }
  0x48   : > { %860 = vmatpush.msrb.mxu3 %v825_v61  ;;  %599 = vmatpush.msrb.mxu0 %v822_v7 }
  0x49   : > { %624 = vmatpush.msrb.mxu1 %v557_v2  ;;  %664 = vmatpush.msrb.mxu2 %v838_v8 }
  0x4a   : > { %861 = vmatpush.msrb.mxu3 %v824_v0  ;;  %600 = vmatpush.msrb.mxu0 %v821_v10 }
  0x4b   : > { %625 = vmatpush.msrb.mxu1 %v556_v6  ;;  %665 = vmatpush.msrb.mxu2 %v837_v11 }
  0x4c   : > { %862 = vmatpush.msrb.mxu3 %v823_v3  ;;  %601 = vmatpush.msrb.mxu0 %v820_v13 }
  0x4d   : > { %626 = vmatpush.msrb.mxu1 %v555_v9  ;;  %666 = vmatpush.msrb.mxu2 %v836_v14 }
  0x4e   : > { %863 = vmatpush.msrb.mxu3 %v822_v7  ;;  %602 = vmatpush.msrb.mxu0 %v819_v15 }
  0x4f   : > { %627 = vmatpush.msrb.mxu1 %v554_v12  ;;  %667 = vmatpush.msrb.mxu2 %v835_v16 }
  0x50   : > { %864 = vmatpush.msrb.mxu3 %v821_v10  ;;  %603 = vmatpush.msrb.mxu0 %v818_v17 }
  0x52   : > { %865 = vmatpush.msrb.mxu3 %v820_v13 }
  0x54   : > { %866 = vmatpush.msrb.mxu3 %v819_v15 }
  0x56   : > { %867 = vmatpush.msrb.mxu3 %v818_v17 }
  0xaa   : > { %v389_v18 = vpop.f32.mrf.mxu0 }
  0xab   : > { %v415_v19 = vpop.f32.mrf.mxu1 }
  0xac   : > { %v416_v23 = vadd.f32 %v415_v19, %v389_v18  ;;  %v834_v18 = vld [vmem:[%s1368_s3 + $0x108] sm:$0xff]  ;;  %v817_v19 = vld [vmem:[%s1368_s3 + $0x80] sm:$0xff] }
  0xad   : > { %668 = vmatpush.msrb.mxu2 %v834_v18  ;;  %604 = vmatpush.msrb.mxu0 %v817_v19 }
  0xae   : > { %868 = vmatpush.msrb.mxu3 %v817_v19 }
  0xaf   : > { %v461_v30 = vpop.f32.mrf.mxu2  ;;  %669 = vmatpush.msrb.mxu2 %v833_v20 }
  0xb0   : > { %v470_v32 = vadd.f32 %v461_v30, %v416_v23 }
  0xb2   : > { %v477_v34 = vadd.f32 %v894_v27, %v470_v32  ;;  %v392_v35 = vpop.f32.mrf.mxu0 }
  0xb3   : > { %v418_v36 = vpop.f32.mrf.mxu1 }
  0xb4   : > { %v419_v38 = vadd.f32 %v418_v36, %v392_v35  ;;  %vm480_vm0 = vcmp.ge.f32.partialorder %v477_v34, 0.0  ;;  %v483_v39 = vmul.f32 0.2, %v477_v34 }
  0xb6   : > { %v486_v40 = vsel %vm480_vm0, %v477_v34, %v483_v39 }
  0xb7   : > { %v464_v41 = vpop.f32.mrf.mxu2  ;;  %525 = vmatmul.f32.vlgmr.msra.gmra.mxu3 %v486_v40 }
  0xb8   : > { %v471_v42 = vadd.f32 %v464_v41, %v419_v38 }
  0xba   : > { %v478_v43 = vadd.f32 %v894_v27, %v471_v42  ;;  %v395_v44 = vpop.f32.mrf.mxu0  ;;  %v896_v42 = vld [vmem:[%s1371_s6] ss:$0 sm:$0xff] }
  0xbb   : > { %v421_v45 = vpop.f32.mrf.mxu1 }
  0xbc   : > { %v422_v46 = vadd.f32 %v421_v45, %v395_v44  ;;  %vm481_vm1 = vcmp.ge.f32.partialorder %v478_v43, 0.0  ;;  %v484_v47 = vmul.f32 0.2, %v478_v43 }
  0xbe   : > { %v487_v48 = vsel %vm481_vm1, %v478_v43, %v484_v47 }
  0xbf   : > { %v467_v49 = vpop.f32.mrf.mxu2  ;;  %528 = vmatmul.f32.gmra.mxu3 %v487_v48 }
  0xc0   : > { %v472_v50 = vadd.f32 %v467_v49, %v422_v46 }
  0xc2   : > { %v479_v51 = vadd.f32 %v894_v27, %v472_v50 }
  0xc4   : > { %vm482_vm2 = vcmp.ge.f32.partialorder %v479_v51, 0.0  ;;  %v485_v52 = vmul.f32 0.2, %v479_v51 }
  0xc6   : > { %v488_v53 = vsel %vm482_vm2, %v479_v51, %v485_v52 }
  0xc7   : > { %531 = vmatmul.f32.gmra.mxu3 %v488_v53 }
 0x13a   : > { %v526_v22 = vpop.f32.mrf.mxu3 }
 0x13b   : > { %v527_v23 = vadd.f32 %v895_v21, %v526_v22 }
 0x13d   : > { %vm535_vm3 = vcmp.ge.f32.partialorder %v527_v23, 0.0  ;;  %v538_v24 = vmul.f32 0.2, %v527_v23 }
 0x13f   : > { %v541_v25 = vsel %vm535_vm3, %v527_v23, %v538_v24 }
 0x140   : > { %544 = vst [vmem:[#allocation3] sm:$0xff] %v541_v25 }
 0x141   : > { %550 = vst [vmem:[#allocation3] sm:$0x1] %v921_v5 }
 0x142   : > { %v529_v26 = vpop.f32.mrf.mxu3 }
 0x143   : > { %v530_v27 = vadd.f32 %v895_v21, %v529_v26 }
 0x145   : > { %vm536_vm4 = vcmp.ge.f32.partialorder %v530_v27, 0.0  ;;  %v539_v28 = vmul.f32 0.2, %v530_v27 }
 0x147   : > { %v542_v29 = vsel %vm536_vm4, %v530_v27, %v539_v28 }
 0x148   : > { %545 = vst [vmem:[#allocation3 + $0x8] sm:$0xff] %v542_v29  ;;  %v552_v30 = vld [vmem:[#allocation3] sm:$0xff] }
 0x149   : > { %628 = vmatmul.f32.vlgmr.msrb.gmra.mxu1 %v552_v30 }
 0x14a   : > { %v532_v31 = vpop.f32.mrf.mxu3 }
 0x14b   : > { %v533_v32 = vadd.f32 %v895_v21, %v532_v31 }
 0x14d   : > { %vm537_vm5 = vcmp.ge.f32.partialorder %v533_v32, 0.0  ;;  %v540_v33 = vmul.f32 0.2, %v533_v32 }
 0x14f   : > { %v543_v34 = vsel %vm537_vm5, %v533_v32, %v540_v33  ;;  %v570_v35 = vld [vmem:[#allocation3 + $0x1] sm:$0xff] }
 0x150   : > { %v635_v36 = vld [vmem:[#allocation3 + $0x2] sm:$0xff]  ;;  %546 = vst [vmem:[#allocation3 + $0x10] sm:$0x3] %v543_v34  ;;  %605 = vmatmul.f32.vlgmr.msrb.gmra.mxu0 %v570_v35 }
 0x151   : > { %670 = vmatmul.f32.vlgmr.msrb.gmra.mxu2 %v635_v36  ;;  %551 = vst [vmem:[#allocation3 + $0x11] sm:$0x1] %v921_v5  ;;  %631 = vmatmul.f32.gmra.mxu1 %v542_v29 }
 0x157   : > { %v571_v37 = vld [vmem:[#allocation3 + $0x9] sm:$0xff] }
 0x158   : > { %608 = vmatmul.f32.vlgmr.msrb.gmra.mxu3 %v571_v37  ;;  %v636_v38 = vld [vmem:[#allocation3 + $0xa] sm:$0xff] }
 0x159   : > { %673 = vmatmul.f32.gmra.mxu2 %v636_v38 }
 0x1c6   : > { %v629_v40 = vpop.f32.mrf.mxu1 }
 0x1cd   : > { %v606_v39 = vpop.f32.mrf.mxu0 }
 0x1ce   : > { %v630_v41 = vadd.f32 %v629_v40, %v606_v39  ;;  %v632_v45 = vpop.f32.mrf.mxu1 }
 0x1d4   : > { %v671_v43 = vpop.f32.mrf.mxu2 }
 0x1d5   : > { %v677_v44 = vadd.f32 %v671_v43, %v630_v41 }
 0x1d7   : > { %v683_v5 = vadd.f32 %v896_v42, %v677_v44 }
 0x1d9   : > { %685 = vst [vmem:[%s300_s28] sm:$0xff] %v683_v5 }
 0x1db   : > { %v609_v46 = vpop.f32.mrf.mxu3 }
 0x1dc   : > { %v633_v47 = vadd.f32 %v632_v45, %v609_v46  ;;  %v674_v48 = vpop.f32.mrf.mxu2 }
 0x1de   : > { %v678_v49 = vadd.f32 %v674_v48, %v633_v47 }
 0x1e0   : > { %v684_v50 = vadd.f32 %v896_v42, %v678_v49 }
 0x1e2   : > { %686 = vst [vmem:[%s300_s28 + $0x8] sm:$0xff] %v684_v50 }
 0x1e3 PF: > { %s17_s26 = sadd.s32 1, %s919_s26   ;;  %s1373_s24 = smov %s915_s25 }
 0x1e4   : > { %p14_p5 = scmp.ge.s32.totalorder %s17_s26, 4   ;;  %s1374_s25 = smov %s1376_s27 }
 0x1e6   :  { %16 = sbr.rel (!%p14_p5) target bundleno = 2 (0x2), region = 105 }

</bundles_post_ra>
